<compile_context>
chip_gen: v7x
topology: tpu7x:2x2x1
jax: 0.10.0
libtpu: 0.0.40
codegen_flags: <defaults>
</compile_context>

<pallas_src>
import functools

import jax
import jax.numpy as jnp
from jax.experimental import pallas as pl
from jax.experimental.pallas import tpu as pltpu


# --------------------------------------------------------------------------- tiling utils

def _divisor_tile(full, target, align):
    """Largest tile <= target, multiple of `align`, dividing `full`; else full dim."""
    if full <= target:
        return full
    t = (min(target, full) // align) * align
    while t >= align:
        if full % t == 0:
            return t
        t -= align
    return full


def _choose_tile(full, target, aligns):
    """Return (tile, padded_full).  Prefer well-aligned divisors of `full`; if none
    exists, pad `full` up to a multiple of `target` (caller zero-pads / slices)."""
    if full <= target:
        return full, full
    for a in aligns:
        t = (target // a) * a
        while t >= a:
            if full % t == 0:
                return t, full
            t -= a
    return target, -(-full // target) * target


@functools.lru_cache(maxsize=1)
def _vmem_limit():
    """Per-generation scoped-VMEM limit: ~70% of physical (≈90 MiB on 128 MiB v5e/v6e,
    ≈44 MiB on 64 MiB v7x), capped at 96 MiB."""
    try:
        cap = int(pltpu.get_tpu_info().vmem_capacity_bytes)
    except Exception:
        cap = 64 * 1024 * 1024
    return int(min(cap * 0.7, 96 * 1024 * 1024))


# --------------------------------------------------------------------------- matmul

def _mm_epilogue(acc, bias, activation):
    out = acc if bias is None else acc + bias
    if activation == "relu":
        out = jnp.maximum(out, 0.0)
    return out


def _matmul_kernel(x_ref, w_ref, o_ref, acc_ref, *, activation):
    @pl.when(pl.program_id(2) == 0)
    def _():
        acc_ref[...] = jnp.zeros_like(acc_ref)

    acc_ref[...] += jnp.dot(x_ref[...], w_ref[...],
                            preferred_element_type=jnp.float32)

    @pl.when(pl.program_id(2) == pl.num_programs(2) - 1)
    def _():
        o_ref[...] = _mm_epilogue(acc_ref[...], None, activation).astype(o_ref.dtype)


def _matmul_bias_kernel(x_ref, w_ref, b_ref, o_ref, acc_ref, *, activation):
    @pl.when(pl.program_id(2) == 0)
    def _():
        acc_ref[...] = jnp.zeros_like(acc_ref)

    acc_ref[...] += jnp.dot(x_ref[...], w_ref[...],
                            preferred_element_type=jnp.float32)

    @pl.when(pl.program_id(2) == pl.num_programs(2) - 1)
    def _():
        o_ref[...] = _mm_epilogue(acc_ref[...], b_ref[...],
                                  activation).astype(o_ref.dtype)


def matmul(x, w, b=None, activation=None, out_dtype=None,
           tm_target=512, tn_target=512, tk_target=512):
    """y = act(x @ w + b): tiled, pipelined, f32 accumulation; pads awkward dims."""
    M, K = x.shape
    _, N = w.shape
    out_dtype = out_dtype or x.dtype

    # M tile aligned to 16 (bf16 packs 16 rows/vreg), preferring 256/128 multiples.
    tm, Mp = _choose_tile(M, tm_target, (256, 128, 16))
    tn, Np = _choose_tile(N, tn_target, (256, 128))
    tk, Kp = _choose_tile(K, tk_target, (256, 128))

    if (Mp, Kp) != (M, K):
        x = jnp.pad(x, ((0, Mp - M), (0, Kp - K)))
    if (Kp, Np) != (K, N):
        w = jnp.pad(w, ((0, Kp - K), (0, Np - N)))

    grid = (Mp // tm, Np // tn, Kp // tk)
    x_spec = pl.BlockSpec((tm, tk), lambda i, j, k: (i, k))
    # TODO(synk): pl.Buffered(3) on the weight stream for long-K matmuls on v5e.
    w_spec = pl.BlockSpec((tk, tn), lambda i, j, k: (k, j))
    o_spec = pl.BlockSpec((tm, tn), lambda i, j, k: (i, j))

    cost = pl.CostEstimate(
        flops=2 * Mp * Np * Kp, transcendentals=0,
        bytes_accessed=(x.size * x.dtype.itemsize + w.size * w.dtype.itemsize
                        + Mp * Np * jnp.dtype(out_dtype).itemsize))

    if b is None:
        kern = functools.partial(_matmul_kernel, activation=activation)
        in_specs = [x_spec, w_spec]
        args = (x, w)
    else:
        b2d = b.reshape(1, N).astype(jnp.float32)
        if Np != N:
            b2d = jnp.pad(b2d, ((0, 0), (0, Np - N)))
        kern = functools.partial(_matmul_bias_kernel, activation=activation)
        in_specs = [x_spec, w_spec, pl.BlockSpec((1, tn), lambda i, j, k: (0, j))]
        args = (x, w, b2d)

    out = pl.pallas_call(
        kern,
        out_shape=jax.ShapeDtypeStruct((Mp, Np), out_dtype),
        grid=grid,
        in_specs=in_specs,
        out_specs=o_spec,
        scratch_shapes=[pltpu.VMEM((tm, tn), jnp.float32)],
        compiler_params=pltpu.CompilerParams(
            dimension_semantics=("parallel", "parallel", "arbitrary"),
            vmem_limit_bytes=_vmem_limit()),
        cost_estimate=cost,
    )(*args)
    if (Mp, Np) != (M, N):
        out = out[:M, :N]
    return out


# --------------------------------------------------------------------------- layernorm (+ fused matmul epilogue)

def _ln_math(s, g, b, out_dtype):
    mu = jnp.mean(s, axis=-1, keepdims=True)
    var = jnp.mean(jnp.square(s - mu), axis=-1, keepdims=True)
    y = (s - mu) * jax.lax.rsqrt(var + 1e-5)
    return (y * g + b).astype(out_dtype)


def _mm_addln_kernel(x_ref, w_ref, r_ref, g_ref, bl_ref, o_ref, acc_ref):
    @pl.when(pl.program_id(1) == 0)
    def _():
        acc_ref[...] = jnp.zeros_like(acc_ref)

    acc_ref[...] += jnp.dot(x_ref[...], w_ref[...],
                            preferred_element_type=jnp.float32)

    @pl.when(pl.program_id(1) == pl.num_programs(1) - 1)
    def _():
        s = acc_ref[...] + r_ref[...].astype(jnp.float32)
        o_ref[...] = _ln_math(s, g_ref[...], bl_ref[...], o_ref.dtype)


def _mm_bias_addln_kernel(x_ref, w_ref, b_ref, r_ref, g_ref, bl_ref, o_ref, acc_ref):
    @pl.when(pl.program_id(1) == 0)
    def _():
        acc_ref[...] = jnp.zeros_like(acc_ref)

    acc_ref[...] += jnp.dot(x_ref[...], w_ref[...],
                            preferred_element_type=jnp.float32)

    @pl.when(pl.program_id(1) == pl.num_programs(1) - 1)
    def _():
        s = acc_ref[...] + b_ref[...] + r_ref[...].astype(jnp.float32)
        o_ref[...] = _ln_math(s, g_ref[...], bl_ref[...], o_ref.dtype)


def matmul_add_ln(x, w, residual, gamma, beta, bias=None, tk_target=512):
    """LayerNorm(residual + x @ w (+ bias)) with residual add + LN fused into the
    matmul epilogue (full output width per block so LN sees the whole row)."""
    M, K = x.shape
    _, N = w.shape

    # keep the (tm, N) f32 accumulator <= ~4 MiB
    tm_target = min(512, max(16, (4 * 1024 * 1024) // (N * 4) // 16 * 16))
    tm, Mp = _choose_tile(M, tm_target, (256, 128, 16))
    tk, Kp = _choose_tile(K, tk_target, (256, 128))

    if (Mp, Kp) != (M, K):
        x = jnp.pad(x, ((0, Mp - M), (0, Kp - K)))
    if Kp != K:
        w = jnp.pad(w, ((0, Kp - K), (0, 0)))
    if Mp != M:
        residual = jnp.pad(residual, ((0, Mp - M), (0, 0)))

    grid = (Mp // tm, Kp // tk)
    x_spec = pl.BlockSpec((tm, tk), lambda i, k: (i, k))
    w_spec = pl.BlockSpec((tk, N), lambda i, k: (k, 0))
    r_spec = pl.BlockSpec((tm, N), lambda i, k: (i, 0))
    v_spec = pl.BlockSpec((1, N), lambda i, k: (0, 0))
    o_spec = pl.BlockSpec((tm, N), lambda i, k: (i, 0))

    g2d = gamma.reshape(1, N).astype(jnp.float32)
    b2d = beta.reshape(1, N).astype(jnp.float32)

    if bias is None:
        kern = _mm_addln_kernel
        in_specs = [x_spec, w_spec, r_spec, v_spec, v_spec]
        args = (x, w, residual, g2d, b2d)
    else:
        kern = _mm_bias_addln_kernel
        in_specs = [x_spec, w_spec, v_spec, r_spec, v_spec, v_spec]
        args = (x, w, bias.reshape(1, N).astype(jnp.float32), residual, g2d, b2d)

    out = pl.pallas_call(
        kern,
        out_shape=jax.ShapeDtypeStruct((Mp, N), residual.dtype),
        grid=grid,
        in_specs=in_specs,
        out_specs=o_spec,
        scratch_shapes=[pltpu.VMEM((tm, N), jnp.float32)],
        compiler_params=pltpu.CompilerParams(
            dimension_semantics=("parallel", "arbitrary"),
            vmem_limit_bytes=_vmem_limit()),
    )(*args)
    return out[:M] if Mp != M else out


def _ln_kernel(x_ref, g_ref, b_ref, o_ref):
    o_ref[...] = _ln_math(x_ref[...].astype(jnp.float32),
                          g_ref[...], b_ref[...], o_ref.dtype)


def layer_norm(x2d, g, b):
    M, D = x2d.shape
    tm = _divisor_tile(M, 1024, 8)
    return pl.pallas_call(
        _ln_kernel,
        out_shape=jax.ShapeDtypeStruct((M, D), x2d.dtype),
        grid=(M // tm,),
        in_specs=[pl.BlockSpec((tm, D), lambda i: (i, 0)),
                  pl.BlockSpec((1, D), lambda i: (0, 0)),
                  pl.BlockSpec((1, D), lambda i: (0, 0))],
        out_specs=pl.BlockSpec((tm, D), lambda i: (i, 0)),
        compiler_params=pltpu.CompilerParams(
            dimension_semantics=("parallel",),
            vmem_limit_bytes=_vmem_limit()),
    )(x2d, g.reshape(1, D).astype(jnp.float32), b.reshape(1, D).astype(jnp.float32))


# --------------------------------------------------------------------------- attention (flash-style, heads in grid)

def _flash_attn_kernel(q_ref, k_ref, v_ref, o_ref, m_sc, l_sc, acc_sc,
                       *, scale, tq, tk):
    qi = pl.program_id(1)
    ki = pl.program_id(2)

    @pl.when(ki == 0)
    def _():
        m_sc[...] = jnp.full_like(m_sc, -jnp.inf)
        l_sc[...] = jnp.zeros_like(l_sc)
        acc_sc[...] = jnp.zeros_like(acc_sc)

    q0 = qi * tq
    k0 = ki * tk

    @pl.when(k0 < q0 + tq)      # skip KV blocks strictly above the causal diagonal
    def _():
        q = q_ref[0]                                     # (tq, dh)
        kb = k_ref[0]                                    # (tk, dh)
        vb = v_ref[0]
        s = jax.lax.dot_general(q, kb, (((1,), (1,)), ((), ())),
                                preferred_element_type=jnp.float32) * scale
        row = q0 + jax.lax.broadcasted_iota(jnp.int32, (tq, tk), 0)
        col = k0 + jax.lax.broadcasted_iota(jnp.int32, (tq, tk), 1)
        s = jnp.where(col <= row, s, -jnp.inf)

        m_prev = m_sc[...]
        m_new = jnp.maximum(m_prev, jnp.max(s, axis=-1, keepdims=True))
        alpha = jnp.exp(m_prev - m_new)
        p = jnp.exp(s - m_new)
        l_sc[...] = alpha * l_sc[...] + jnp.sum(p, axis=-1, keepdims=True)
        acc_sc[...] = alpha * acc_sc[...] + jax.lax.dot_general(
            p.astype(vb.dtype), vb, (((1,), (0,)), ((), ())),
            preferred_element_type=jnp.float32)
        m_sc[...] = m_new

    @pl.when(ki == pl.num_programs(2) - 1)
    def _():
        # approx reciprocal (EUP): tiny relative error vs an exact divide.
        inv = pl.reciprocal(l_sc[...], approx=True)
        o_ref[0] = (acc_sc[...] * inv).astype(o_ref.dtype)


def flash_attention(q, k, v, tq_target=256, tk_target=256):
    """Causal attention with heads folded into the grid. q/k/v: [B*H, S, dh]."""
    BH, S, dh = q.shape
    tq = _divisor_tile(S, tq_target, 8)
    tk = _divisor_tile(S, tk_target, 8)
    kern = functools.partial(_flash_attn_kernel,
                             scale=float(dh) ** -0.5, tq=tq, tk=tk)
    return pl.pallas_call(
        kern,
        out_shape=jax.ShapeDtypeStruct((BH, S, dh), q.dtype),
        grid=(BH, S // tq, S // tk),
        in_specs=[pl.BlockSpec((1, tq, dh), lambda bh, qi, ki: (bh, qi, 0)),
                  pl.BlockSpec((1, tk, dh), lambda bh, qi, ki: (bh, ki, 0)),
                  pl.BlockSpec((1, tk, dh), lambda bh, qi, ki: (bh, ki, 0))],
        out_specs=pl.BlockSpec((1, tq, dh), lambda bh, qi, ki: (bh, qi, 0)),
        scratch_shapes=[pltpu.VMEM((tq, 1), jnp.float32),
                        pltpu.VMEM((tq, 1), jnp.float32),
                        pltpu.VMEM((tq, dh), jnp.float32)],
        compiler_params=pltpu.CompilerParams(
            dimension_semantics=("parallel", "parallel", "arbitrary"),
            vmem_limit_bytes=_vmem_limit()),
    )(q, k, v)


def attention(qkv2d, B, S, n_heads, dh):
    """qkv2d: [B*S, 3*D] packed [Q|K|V] -> [B*S, D] (fused-head layout)."""
    D = n_heads * dh
    qkv = qkv2d.reshape(B, S, 3, n_heads, dh).transpose(2, 0, 3, 1, 4)  # (3,B,H,S,dh)
    q = qkv[0].reshape(B * n_heads, S, dh)
    k = qkv[1].reshape(B * n_heads, S, dh)
    v = qkv[2].reshape(B * n_heads, S, dh)
    # TODO(synk): group 128//dh heads per dot_general when dh < 128 to fill MXU width.
    out = flash_attention(q, k, v)                                       # (B*H, S, dh)
    return out.reshape(B, n_heads, S, dh).transpose(0, 2, 1, 3).reshape(B * S, D)


# --------------------------------------------------------------------------- embed scale + positional encoding

def _scale_pe_kernel(h_ref, pe_ref, o_ref, *, scale):
    o_ref[...] = (h_ref[...].astype(jnp.float32) * scale
                  + pe_ref[...]).astype(o_ref.dtype)


def scale_add_pe(h, pe, out_dtype=jnp.bfloat16):
    """h * sqrt(dim) + pe[:S]  (dropout = identity, eval mode)."""
    B, S, D = h.shape
    ts = _divisor_tile(S, 512, 8)
    kern = functools.partial(_scale_pe_kernel, scale=float(D) ** 0.5)
    return pl.pallas_call(
        kern,
        out_shape=jax.ShapeDtypeStruct((B, S, D), out_dtype),
        grid=(B, S // ts),
        in_specs=[pl.BlockSpec((1, ts, D), lambda b, si: (b, si, 0)),
                  pl.BlockSpec((ts, D), lambda b, si: (si, 0))],
        out_specs=pl.BlockSpec((1, ts, D), lambda b, si: (b, si, 0)),
        compiler_params=pltpu.CompilerParams(
            dimension_semantics=("parallel", "parallel"),
            vmem_limit_bytes=_vmem_limit()),
    )(h, pe.astype(jnp.float32))


# --------------------------------------------------------------------------- params

def _linear_init(key, fan_in, fan_out, bias=True):
    kw, kb = jax.random.split(key)
    bound = 1.0 / (fan_in ** 0.5)
    w = jax.random.uniform(kw, (fan_in, fan_out), jnp.float32, -bound, bound)
    b = (jax.random.uniform(kb, (fan_out,), jnp.float32, -bound, bound)
         if bias else jnp.zeros((fan_out,), jnp.float32))
    return w, b


def make_positional_encoding(max_len, dim):
    # theta = pi/2 - pos * 10000^(-2i/dim); view_as_real(exp(i*theta)) = [cos, sin]
    pos = jnp.arange(max_len, dtype=jnp.float32)
    omega = 10000.0 ** (-jnp.arange(0, dim, 2, dtype=jnp.float32) / dim)
    theta = jnp.pi / 2 - pos[:, None] * omega[None, :]
    pe = jnp.stack([jnp.cos(theta), jnp.sin(theta)], axis=-1)
    return pe.reshape(max_len, dim)


def init_params(key, V, n_layers, dim, n_heads, hidden_dim, max_seq,
                compute_dtype=jnp.bfloat16):
    keys = jax.random.split(key, 4 + n_layers)
    params = {
        "dim": dim, "n_heads": n_heads, "V": V,
        # bf16 embedding table: halves gather + PE-kernel input HBM traffic
        "embed": jax.random.uniform(keys[0], (V, dim), jnp.float32,
                                    -0.1, 0.1).astype(compute_dtype),
        "pe": make_positional_encoding(max_seq, dim),            # f32
        "norm_g": jnp.ones((dim,), jnp.float32),
        "norm_b": jnp.zeros((dim,), jnp.float32),
    }
    out_w, out_b = _linear_init(keys[1], dim, V, bias=True)
    params["out_w"] = out_w.astype(compute_dtype)
    params["out_b"] = out_b                                      # bias stays f32
    layers = []
    for li in range(n_layers):
        lk = jax.random.split(keys[4 + li], 6)
        wq, _ = _linear_init(lk[0], dim, dim, bias=False)
        wk, _ = _linear_init(lk[1], dim, dim, bias=False)
        wv, _ = _linear_init(lk[2], dim, dim, bias=False)
        wo, _ = _linear_init(lk[3], dim, dim, bias=False)
        w1, b1 = _linear_init(lk[4], dim, hidden_dim, bias=True)
        w2, b2 = _linear_init(lk[5], hidden_dim, dim, bias=True)
        layers.append({
            # fused QKV projection weight [D, 3D] (== 3 separate bias-free Linears)
            "wqkv": jnp.concatenate([wq, wk, wv], axis=1).astype(compute_dtype),
            "wo": wo.astype(compute_dtype),
            "w1": w1.astype(compute_dtype), "b1": b1,
            "w2": w2.astype(compute_dtype), "b2": b2,
            "atn_g": jnp.ones((dim,), jnp.float32), "atn_b": jnp.zeros((dim,), jnp.float32),
            "ffn_g": jnp.ones((dim,), jnp.float32), "ffn_b": jnp.zeros((dim,), jnp.float32),
        })
    params["layers"] = layers
    return params


# --------------------------------------------------------------------------- forward

def transformer_forward(params, tokens):
    B, S = tokens.shape
    dim = params["dim"]
    H = params["n_heads"]
    dh = dim // H

    # TODO(synk): embedding lookup stays an XLA gather; dropout layers are identity (eval).
    h = jnp.take(params["embed"], tokens, axis=0)              # (B, S, D) bf16
    h = scale_add_pe(h, params["pe"][:S])                      # (B, S, D) bf16

    x2 = h.reshape(B * S, dim)
    for lyr in params["layers"]:
        # --- attention sublayer: fused QKV matmul -> flash attention -> wo (+residual+LN) ---
        qkv = matmul(x2, lyr["wqkv"])                          # (B*S, 3D), no bias
        att = attention(qkv, B, S, H, dh)                      # (B*S, D)
        h1 = matmul_add_ln(att, lyr["wo"], x2, lyr["atn_g"], lyr["atn_b"])

        # --- feed-forward sublayer: fc1(+bias, ReLU) -> fc2 (+bias+residual+LN) ---
        ffn = matmul(h1, lyr["w1"], lyr["b1"], activation="relu")
        x2 = matmul_add_ln(ffn, lyr["w2"], h1, lyr["ffn_g"], lyr["ffn_b"], bias=lyr["b2"])
        # TODO(synk): fully fuse QKV+attention+O into one flash-style kernel to drop the
        # remaining (B*S,3D)/(B*S,D) activation round trips.

    # final norm + vocab projection (logits in f32)
    h2 = layer_norm(x2, params["norm_g"], params["norm_b"])
    logits = matmul(h2, params["out_w"], params["out_b"], out_dtype=jnp.float32)
    return logits.reshape(B, S, params["V"])


# --------------------------------------------------------------------------- main

if __name__ == "__main__":
    key = jax.random.PRNGKey(0)

    V, n_layers, dim, n_heads, hidden_dim = 64, 2, 32, 4, 32
    B, S = 2, 8

    params = init_params(key, V, n_layers, dim, n_heads, hidden_dim, max_seq=64)
    tokens = jax.random.randint(jax.random.fold_in(key, 999), (B, S), 0, V, dtype=jnp.int32)

    logits = transformer_forward(params, tokens)
    logits = jax.block_until_ready(logits)

    assert logits.shape == (B, S, V), logits.shape
    assert bool(jnp.all(jnp.isfinite(logits)))
    print("KERNEL_OK")
</pallas_src>

<mosaic_0001>
module attributes {stable_mosaic.version = 11 : i64} {
  func.func @_scale_pe_kernel(%arg0: i32, %arg1: i32, %arg2: memref<1x8x32xbf16, #tpu.memory_space<vmem>>, %arg3: memref<8x32xf32, #tpu.memory_space<vmem>>, %arg4: memref<1x8x32xbf16, #tpu.memory_space<vmem>>) attributes {dimension_semantics = [#tpu.dimension_semantics<parallel>, #tpu.dimension_semantics<parallel>], iteration_bounds = array<i64: 2, 1>, scalar_prefetch = 0 : i64, scratch_operands = 0 : i64, tpu.core_type = #tpu.core_type<tc>, window_params = [{transform_indices = @transform_0, window_bounds = array<i64: 1, 8, 32>}, {transform_indices = @transform_1, window_bounds = array<i64: 8, 32>}, {transform_indices = @transform_2, window_bounds = array<i64: 1, 8, 32>}]} {
    %c0 = arith.constant 0 : index
    %c0_0 = arith.constant 0 : index
    %c0_1 = arith.constant 0 : index
    %0 = vector.load %arg2[%c0, %c0_0, %c0_1] : memref<1x8x32xbf16, #tpu.memory_space<vmem>>, vector<1x8x32xbf16>
    %1 = arith.extf %0 : vector<1x8x32xbf16> to vector<1x8x32xf32>
    %cst = arith.constant 5.65685415 : f32
    %2 = vector.broadcast %cst : f32 to vector<1x8x32xf32>
    %3 = arith.mulf %1, %2 : vector<1x8x32xf32>
    %c0_2 = arith.constant 0 : index
    %c0_3 = arith.constant 0 : index
    %4 = vector.load %arg3[%c0_2, %c0_3] : memref<8x32xf32, #tpu.memory_space<vmem>>, vector<8x32xf32>
    %5 = vector.shape_cast %4 : vector<8x32xf32> to vector<1x8x32xf32>
    %6 = arith.addf %3, %5 : vector<1x8x32xf32>
    %7 = arith.truncf %6 : vector<1x8x32xf32> to vector<1x8x32xbf16>
    %c0_4 = arith.constant 0 : index
    %c0_5 = arith.constant 0 : index
    %c0_6 = arith.constant 0 : index
    %8 = vector.load %arg4[%c0_4, %c0_5, %c0_6] : memref<1x8x32xbf16, #tpu.memory_space<vmem>>, vector<1x8x32xbf16>
    tpu.vector_store %arg4[%c0_4, %c0_5, %c0_6], %7 {strides = array<i32>} : memref<1x8x32xbf16, #tpu.memory_space<vmem>>, vector<1x8x32xbf16>,
    return
  }
  func.func @transform_0(%arg0: i32, %arg1: i32) -> (i32, i32, i32) {
    %c0_i32 = arith.constant 0 : i32
    %c0_i32_0 = arith.constant 0 : i32
    return %arg0, %arg1, %c0_i32 : i32, i32, i32
  }
  func.func @transform_1(%arg0: i32, %arg1: i32) -> (i32, i32) {
    %c0_i32 = arith.constant 0 : i32
    %c0_i32_0 = arith.constant 0 : i32
    return %arg1, %c0_i32 : i32, i32
  }
  func.func @transform_2(%arg0: i32, %arg1: i32) -> (i32, i32, i32) {
    %c0_i32 = arith.constant 0 : i32
    %c0_i32_0 = arith.constant 0 : i32
    return %arg0, %arg1, %c0_i32 : i32, i32, i32
  }
}

</mosaic_0001>

<bundles_post_ra>
// kernel: tpu_custom_call.1
= control target key start
LH: loop header
LB: loop body
LE: loop exit
PB: predicated region body
PF: predicated region fallthrough
CT: control target
= control target key end

     0   :  { %7 = vsyncpa [#allocation3], 0  ;;  %s779_s0 = inlined_call_operand.hbm [shape: bf16[2,8,32], index: 0, kind: input, shape index: {}]   ;;  %s780_s1 = inlined_call_operand.hbm [shape: f32[8,32], index: 1, kind: input, shape index: {}]   ;;  %s781_s2 = inlined_call_operand.hbm [shape: bf16[2,8,32], index: 2, kind: output, shape index: {}]  }
   0x1   :  { %9 = vsyncpa [#allocation3 + $0x1], 0 }
   0x2   :  { %10 = vsyncpa [#allocation6], 0 }
   0x3   :  { %11 = vsyncpa [#allocation4], 0 }
   0x4   :  { %13 = vsyncpa [#allocation4 + $0x1], 0  ;;  %s563_s9 = smov 0   ;;  %s565_s10 = smov 0  }
   0x5   :  { %s567_s11 = smov 0   ;;  %s569_s12 = smov 0  }
   0x6   :  { %s571_s13 = smov 0   ;;  %s573_s14 = smov 0  }
   0x7 LB: > { %s311_s15 = sadd.s32 4294967295, %s543_s14   ;;  %s312_s16 = sadd.s32 4294967294, %s543_s14   ;;  %s543_s14 = sphi %s573_s14, %s19_s14   ;;  %s539_s13 = sphi %s571_s13, %s806_s13   ;;  %s535_s12 = sphi %s569_s12, %s805_s12   ;;  %s531_s11 = sphi %s567_s11, %s804_s11   ;;  %s527_s10 = sphi %s565_s10, %s803_s10   ;;  %s523_s9 = sphi %s563_s9, %s802_s9  }
   0x8   : > { %p53_p0 = scmp.ne.s32.totalorder %s527_s10, %s523_s9  ;;  %p597_p1 = scmp.eq.s32.totalorder %s311_s15, 0 }
   0x9   : > { %p601_p2 = scmp.eq.s32.totalorder %s311_s15, 1  ;;  %p111_p3 = scmp.eq.s32.totalorder %s312_s16, 1 }
   0xa   : > { %s786_s17 = scalar_select %p597_p1, 1, 0 }
   0xb   : > { %s787_s18 = scalar_select %p601_p2, 1, 0 }
   0xc   : > { %p607_p4 = por %p597_p1, %p53_p0  ;;  %p313_p5 = scmp.ge.s32.totalorder %s543_s14, 1 }
   0xd   : > { %p612_p6 = por %p111_p3, %p53_p0  ;;  %p118_p7 = scmp.lt.s32.totalorder %s543_s14, 3 }
   0xe   : > { %s788_s19 = scalar_select %p607_p4, 1, 0 }
   0xf   : > { %s789_s20 = scalar_select %p612_p6, 1, 0 }
  0x10   : > { %p617_p8 = pnand %p313_p5, %p118_p7  ;;  %s545_s22 = smov [#allocation5]  }
  0x11   : > { %s133_s23 = sshll.u32 %s545_s22, 4  ;;  %s31_s25 = sadd.s32 1, %s539_s13  ;;  %s134_s23 = int_to_ptr.vmem [resolvable:$true] %s133_s23 }
  0x12   : > { %s790_s21 = scalar_select %p617_p8, 1, 0 }
  0x13   : > { %p334_p10 = pneg %p617_p8  ;;  %s40_s26 = sadd.s32 1, %s531_s11 }
  0x14   : > { %p632_p12 = scmp.ge.s32.totalorder %s31_s25, 2  ;;  %s399_s30 = scalar_lea.hbm %s780_s1, 128 }
  0x15   : > { %p626_p11 = pnand %p334_p10, %p597_p1  ;;  %p400_p13 = scmp.ne.s32.totalorder %s780_s1, %s399_s30 }
  0x16   : > { %s792_s27 = scalar_select %p632_p12, 1, 0 }
  0x17   : > { %p401_p0 = pneg %p626_p11  ;;  %p406_p7 = scmp.lt.u32.totalorder %s399_s30, %s780_s1 }
  0x19   : > { %p402_p3 = pnand %p401_p0, %p400_p13 }
  0x1b   : > { %p403_p5 = pneg %p402_p3 }
  0x1d   : > { %p408_p10 = pnand %p406_p7, %p403_p5 }
  0x1f   : > { %411 = shalt.err (!%p408_p10)
}
  0x20   : > { %s412_s7 = scalar_lea.vmem %s134_s23, 128  ;;  %p420_p4 = scmp.lt.s32.totalorder %s134_s23, %s134_s23 }
  0x21   : > { %p413_p9 = scmp.ne.s32.totalorder %s134_s23, %s412_s7  ;;  %p421_p8 = scmp.lt.s32.totalorder %s412_s7, %s412_s7 }
  0x23   : > { %p415_p6 = pnand %p413_p9, %p401_p0  ;;  %p422_p2 = por %p421_p8, %p420_p4 }
  0x25   : > { %p416_p1 = pneg %p415_p6 }
  0x27   : > { %p423_p12 = pnand %p422_p2, %p416_p1 }
  0x29   : > { %426 = shalt.err (!%p423_p12)
}
  0x2a   : > { %337 = dma.hbm_to_vmem [thread:$0]  (!%p626_p11), %s780_s1, 128, %s134_s23, [#allocation6]  }
  0x2b   : > { %p793_p4 = scmp.ne.s32.totalorder %s792_s27, 0  ;;  %p47_p1 = scmp.ne.s32.totalorder %s531_s11, %s527_s10 }
  0x2c   : > { %p48_p2 = scmp.eq.s32.totalorder %s543_s14, 0  ;;  %p347_p6 = scmp.lt.s32.totalorder %s543_s14, 2 }
  0x2d   : > { %s808_s25 = smov (%p793_p4, %s31_s25), 0  ;;  %p794_p12 = scmp.ne.s32.totalorder %s787_s18, 0 }
  0x2e   : > { %s35_s16 = ssub.s32 %s539_s13, %s808_s25  ;;  %p49_p9 = por %p48_p2, %p47_p1 }
  0x2f   : > { %p38_p8 = scmp.eq.s32.totalorder %s35_s16, 0  ;;  %p664_p13 = por %p794_p12, %p47_p1 }
  0x30   : > { %s144_s24 = sand.u32 1, %s531_s11   ;;  %s317_s27 = sshll.u32 %s539_s13, 6 }
  0x31   : > { %s672_s28 = scalar_select %p38_p8, %s531_s11, %s40_s26  }
  0x32   : > { %s316_s23 = sshll.u32 %s144_s24, 2  ;;  %s678_s3 = scalar_lea.hbm %s779_s0, %s317_s27 }
  0x33   : > { %s148_s18 = scalar_lea.vmem [#allocation2], %s316_s23  ;;  %p682_p11 = pnand %p347_p6, %p49_p9 }
  0x34   : > { %s156_s4 = sshll.u32 %s148_s18, 4  ;;  %s145_s26 = scalar_lea.sflag [#allocation3], %s144_s24  ;;  %s680_s4 = int_to_ptr.vmem [resolvable:$true] %s156_s4 }
  0x35   : > { %s427_s6 = scalar_lea.hbm %s678_s3, 64  ;;  %p429_p3 = pneg %p682_p11 }
  0x36   : > { %p428_p0 = scmp.ne.s32.totalorder %s678_s3, %s427_s6  ;;  %s432_s15 = scalar_lea.hbm %s779_s0, 128 }
  0x37   : > { %p433_p10 = scmp.lt.u32.totalorder %s678_s3, %s779_s0  ;;  %p434_p4 = scmp.lt.u32.totalorder %s432_s15, %s427_s6 }
  0x38   : > { %p430_p5 = pnand %p429_p3, %p428_p0  ;;  %p436_p2 = scmp.lt.u32.totalorder %s427_s6, %s678_s3 }
  0x39   : > { %p435_p1 = por %p434_p4, %p433_p10 }
  0x3a   : > { %p431_p7 = pneg %p430_p5 }
  0x3b   : > { %p437_p6 = por %p436_p2, %p435_p1 }
  0x3d   : > { %p438_p8 = pnand %p437_p6, %p431_p7 }
  0x3f   : > { %441 = shalt.err (!%p438_p8)
}
  0x40   : > { %s442_s24 = scalar_lea.vmem %s680_s4, 64  ;;  %s546_s27 = smov [#allocation2]  }
  0x41   : > { %p443_p9 = scmp.ne.s32.totalorder %s680_s4, %s442_s24  ;;  %s447_s29 = sshll.u32 %s546_s27, 4  ;;  %s448_s29 = int_to_ptr.vmem [resolvable:$false] %s447_s29 }
  0x42   : > { %s449_s30 = scalar_lea.vmem %s448_s29, 128  ;;  %p450_p5 = scmp.lt.s32.totalorder %s680_s4, %s448_s29 }
  0x43   : > { %p445_p12 = pnand %p443_p9, %p429_p3  ;;  %p451_p10 = scmp.lt.s32.totalorder %s449_s30, %s442_s24 }
  0x45   : > { %p446_p0 = pneg %p445_p12  ;;  %p452_p4 = por %p451_p10, %p450_p5 }
  0x47   : > { %p453_p1 = pnand %p452_p4, %p446_p0 }
  0x49   : > { %456 = shalt.err (!%p453_p1)
}
  0x4a   : > { %341 = dma.hbm_to_vmem [thread:$0]  (!%p682_p11), %s678_s3, 64, %s680_s4, %s145_s26  }
  0x4b   : > { %p797_p7 = scmp.ne.s32.totalorder %s790_s21, 0 }
  0x4c   : > { %s714_s18 = sand.u32 (!%p797_p7), 1, %s527_s10   ;;  %p798_p3 = scmp.ne.s32.totalorder (!%p797_p7), %s788_s19, 0 }
  0x4d   : > { %165 = sbr.rel (%p797_p7) target bundleno = 113 (0x71), region = 28  ;;  %s319_s6 = sshll.u32 (!%p797_p7), %s714_s18, 2 }
  0x4e   : > { %s168_s7 = scalar_lea.sflag (!%p797_p7), [#allocation3], %s714_s18  ;;  %s171_s8 = scalar_lea.vmem (!%p797_p7), [#allocation2], %s319_s6 }
  0x54   : > { %510 = dma.done.wait (%p798_p3), %s168_s7, 64  }
  0x55   : > { %512 = vsyncadd (%p798_p3), %s168_s7, 4294967232  ;;  %p799_p2 = scmp.ne.s32.totalorder %s786_s17, 0 }
  0x57   : > { %514 = dma.done.wait (%p799_p2), [#allocation6], 128  }
  0x58   : > { %516 = vsyncadd (%p799_p2), [#allocation6], 4294967168  ;;  %v196_v0 = vld [vmem:[%s171_s8] sm:$0xf]  ;;  %v199_v2 = vld [vmem:[#allocation5] sm:$0xff]  ;;  %s195_s21 = scalar_lea.vmem [#allocation7], %s319_s6 }
  0x59   : > { %v197_v1 = vunpack.c.l.bf16 %v196_v0  ;;  %s219_s3 = sshll.u32 %s195_s21, 4  ;;  %s323_s4 = sshll.u32 %s535_s12, 6  ;;  %vm202_vm0 = vcmask 257024   ;;  %s727_s3 = int_to_ptr.vmem [resolvable:$true] %s219_s3 }
  0x5a   : > { %s732_s17 = scalar_lea.hbm %s781_s2, %s323_s4  ;;  %s205_s26 = scalar_lea.sflag [#allocation4], %s714_s18 }
  0x5b   : > { %v198_v3 = vmul.f32 5.656854, %v197_v1  ;;  %s457_s15 = scalar_lea.vmem %s727_s3, 64  ;;  %s547_s12 = smov [#allocation7]  }
  0x5c   : > { %p458_p11 = scmp.ne.s32.totalorder %s727_s3, %s457_s15  ;;  %s461_s16 = sshll.u32 %s547_s12, 4  ;;  %s462_s16 = int_to_ptr.vmem [resolvable:$false] %s461_s16 }
  0x5d   : > { %v200_v4 = vadd.f32 %v199_v2, %v198_v3  ;;  %s463_s23 = scalar_lea.vmem %s462_s16, 128  ;;  %p464_p9 = scmp.lt.s32.totalorder %s727_s3, %s462_s16 }
  0x5e   : > { %p459_p6 = pnand %p458_p11, %p664_p13  ;;  %p465_p12 = scmp.lt.s32.totalorder %s463_s23, %s457_s15 }
  0x5f   : > { %v201_v5 = vpack.c.bf16 %v200_v4, %v200_v4 }
  0x60   : > { %p460_p8 = pneg %p459_p6  ;;  %p466_p0 = por %p465_p12, %p464_p9 }
  0x61   : > { %203 = vst.msk [vmem:[%s195_s21] sm:$0xf] %vm202_vm0, %v201_v5 }
  0x62   : > { %p467_p5 = pnand %p466_p0, %p460_p8 }
  0x64   : > { %470 = shalt.err (!%p467_p5)
}
  0x65   : > { %s471_s24 = scalar_lea.hbm %s732_s17, 64  ;;  %s475_s30 = scalar_lea.hbm %s781_s2, 128 }
  0x66   : > { %p472_p10 = scmp.ne.s32.totalorder %s732_s17, %s471_s24  ;;  %p476_p7 = scmp.lt.u32.totalorder %s732_s17, %s781_s2 }
  0x67   : > { %p477_p3 = scmp.lt.u32.totalorder %s475_s30, %s471_s24  ;;  %p479_p11 = scmp.lt.u32.totalorder %s471_s24, %s732_s17 }
  0x68   : > { %p473_p4 = pnand %p472_p10, %p664_p13 }
  0x69   : > { %p478_p2 = por %p477_p3, %p476_p7 }
  0x6a   : > { %p474_p1 = pneg %p473_p4 }
  0x6b   : > { %p480_p6 = por %p479_p11, %p478_p2 }
  0x6d   : > { %p481_p8 = pnand %p480_p6, %p474_p1 }
  0x6f   : > { %484 = shalt.err (!%p481_p8)
}
  0x70   : > { %332 = dma.vmem_to_hbm [thread:$0]  (%p664_p13), %s727_s3, 64, %s732_s17, %s205_s26  }
  0x71 PF: > { %s231_s7 = sand.u32 1, %s523_s9   ;;  %p800_p9 = scmp.ne.s32.totalorder %s789_s20, 0 }
  0x72   : > { %p801_p12 = scmp.ge.s32.totalorder %s543_s14, 2  ;;  %s232_s8 = scalar_lea.sflag [#allocation4], %s231_s7 }
  0x74   : > { %p343_p0 = pnand %p801_p12, %p800_p9 }
  0x76   : > { %518 = dma.done.wait (!%p343_p0), %s232_s8, 64  }
  0x77   : > { %520 = vsyncadd (!%p343_p0), %s232_s8, 4294967232  ;;  %s19_s14 = sadd.s32 1, %s543_s14   ;;  %s802_s9 = smov %s527_s10 }
  0x78   : > { %p16_p5 = scmp.ge.s32.totalorder %s19_s14, 4   ;;  %s803_s10 = smov %s531_s11 }
  0x79   : > { %s804_s11 = smov %s672_s28  ;;  %s805_s12 = smov %s539_s13 }
  0x7a   : > { %s806_s13 = smov %s808_s25  ;;  %18 = sbr.rel (!%p16_p5) target bundleno = 7 (0x7), region = 78 }
  0x81   :  { %237 = vsyncpa [#allocation3], 1 }
  0x82   :  { %239 = vsyncpa [#allocation3 + $0x1], 1 }
  0x83   :  { %240 = vsyncpa [#allocation6], 1 }
  0x84   :  { %241 = vsyncpa [#allocation4], 1 }
  0x85   :  { %243 = vsyncpa [#allocation4 + $0x1], 1 }

</bundles_post_ra>
